<compile_context>
chip_gen: v5e
topology: v5e:2x2
jax: 0.10.0
libtpu: 0.0.40
codegen_flags: <defaults>
</compile_context>

<pallas_src>
import functools

import jax
import jax.numpy as jnp
from jax.experimental import pallas as pl
from jax.experimental.pallas import tpu as pltpu


def _round_up(v: int, m: int) -> int:
    return ((v + m - 1) // m) * m


def _vmem_budget_bytes() -> int:
    """~3/4 of this generation's physical VMEM per TensorCore.

    96 MiB on v5e/v6e (128 MiB parts), 48 MiB on v7x (64 MiB/TC).  Falls back
    to the conservative 48 MiB if the hardware query is unavailable.
    """
    cap = 64 * 1024 * 1024  # conservative default (v7x per-TC)
    try:
        info = pltpu.get_tpu_info()
        cap = int(getattr(info, "vmem_capacity_bytes", cap))
    except Exception:
        pass
    return (cap // 4) * 3


def _patch_embed_kernel(x_ref, w_ref, b_ref, o_ref):
    # x_ref: (tile_m, K)   w_ref: (K, E)   b_ref: (1, E) f32   o_ref: (tile_m, E)
    # MXU matmul with f32 accumulation; bias fused; single pass over output.
    acc = jnp.dot(x_ref[...], w_ref[...], preferred_element_type=jnp.float32)
    o_ref[...] = (acc + b_ref[...]).astype(o_ref.dtype)


def patch_embed_3d(x, weight, bias, kernel_size, *, tile_m=None,
                   compute_dtype=jnp.bfloat16, out_dtype=None):
    """Forward pass of PatchEmbed3D (Conv3d stride==kernel, pad=0, + permute).

    Args:
      x:      (N, C, D, H, W)      -- NCDHW, same as PyTorch.
      weight: (E, C, kD, kH, kW)   -- Conv3d weight.
      bias:   (E,)
      kernel_size: (kD, kH, kW)
      tile_m: patch rows per grid step (default: auto, grown to fill VMEM).
      compute_dtype: MXU operand dtype (default bf16; accumulation stays f32).
      out_dtype: output dtype (default x.dtype, matching the PyTorch module).

    Returns:
      (N, nD, nH, nW, E) -- identical to proj(x).permute(0, 2, 3, 4, 1).
    """
    N, C, D, H, W = x.shape
    kD, kH, kW = kernel_size
    E = weight.shape[0]
    assert D % kD == 0 and H % kH == 0 and W % kW == 0, "stride==kernel, pad=0"
    nD, nH, nW = D // kD, H // kH, W // kW
    M = N * nD * nH * nW
    K = C * kD * kH * kW

    if out_dtype is None:
        out_dtype = x.dtype
    if compute_dtype is None:
        compute_dtype = x.dtype

    # --- im2col (pure permutation since stride == kernel) --------------------
    # (N,C,D,H,W) -> (M, K), patch flattened as (C,kD,kH,kW) to match
    # weight.reshape(E, K).  The bf16 cast fuses into this pass.
    xp = x.reshape(N, C, nD, kD, nH, kH, nW, kW)
    xp = xp.transpose(0, 2, 4, 6, 1, 3, 5, 7)
    patches = xp.reshape(M, K).astype(compute_dtype)

    w_mat = weight.reshape(E, K).T.astype(compute_dtype)   # (K, E)
    b_mat = bias.reshape(1, E).astype(jnp.float32)         # (1, E), f32

    # --- pick tile_m: fill (but never exceed) the generation's VMEM budget ---
    in_bytes = jnp.dtype(compute_dtype).itemsize
    out_bytes = jnp.dtype(out_dtype).itemsize
    k_lanes = _round_up(K, 128)   # lane-padded widths as resident in VMEM
    e_lanes = _round_up(E, 128)

    def vmem_need(tm):
        return (2 * tm * k_lanes * in_bytes        # double-buffered patches
                + 2 * k_lanes * e_lanes * in_bytes  # weight (2 bufs allocated)
                + 2 * 8 * e_lanes * 4               # bias (sublane-padded)
                + 2 * tm * e_lanes * out_bytes)     # double-buffered output

    budget = _vmem_budget_bytes()
    if tile_m is None:
        tile_m = 2048                               # target 1024-2048 rows
    tile_m = min(_round_up(int(tile_m), 16), _round_up(M, 16))
    tile_m = max(tile_m, 16)
    while tile_m > 16 and vmem_need(tile_m) > budget:
        tile_m = _round_up(tile_m // 2, 16)

    # Ragged boundary block (M % tile_m != 0) is handled by Pallas: pad rows
    # read unspecified data but their output rows are masked on store.  This
    # is safe because there is no cross-row reduction in the kernel.
    grid = (pl.cdiv(M, tile_m),)

    out = pl.pallas_call(
        _patch_embed_kernel,
        out_shape=jax.ShapeDtypeStruct((M, E), out_dtype),
        grid=grid,
        in_specs=[
            pl.BlockSpec((tile_m, K), lambda i: (i, 0)),
            pl.BlockSpec((K, E), lambda i: (0, 0)),   # grid-invariant: DMA'd once
            pl.BlockSpec((1, E), lambda i: (0, 0)),   # grid-invariant
        ],
        out_specs=pl.BlockSpec((tile_m, E), lambda i: (i, 0)),
        compiler_params=pltpu.CompilerParams(
            dimension_semantics=("parallel",),
            vmem_limit_bytes=int(budget),
            allow_input_fusion=[True, False, False],
        ),
    )(patches, w_mat, b_mat)

    return out.reshape(N, nD, nH, nW, E)


def _reference(x, weight, bias, kernel_size):
    """Pure-JAX reference matching nn.Conv3d(stride=kernel, pad=0) + permute."""
    out = jax.lax.conv_general_dilated(
        x, weight,
        window_strides=kernel_size,
        padding="VALID",
        dimension_numbers=("NCDHW", "OIDHW", "NCDHW"),
    )
    out = out + bias.reshape(1, -1, 1, 1, 1)
    return out.transpose(0, 2, 3, 4, 1)


if __name__ == "__main__":
    # Small shapes consistent with the module's forward (stride == kernel).
    N, C = 2, 2
    D = H = W = 8
    kernel_size = (4, 4, 4)
    embed_dim = 128          # K = C*kD*kH*kW = 128; E lane-dense

    key = jax.random.PRNGKey(0)
    kx, kw, kb = jax.random.split(key, 3)
    x = jax.random.normal(kx, (N, C, D, H, W), dtype=jnp.float32)
    weight = (jax.random.normal(kw, (embed_dim, C, *kernel_size),
                                dtype=jnp.float32) * 0.02)
    bias = jax.random.normal(kb, (embed_dim,), dtype=jnp.float32) * 0.01

    ref = _reference(x, weight, bias, kernel_size)
    assert ref.shape == (N, 2, 2, 2, embed_dim)

    # Default path: bf16 MXU operands, f32 accumulation, f32 output.  Jitting
    # the whole forward keeps the im2col permutation in the same XLA program
    # as the pallas_call so allow_input_fusion has a chance to fold it.
    fwd_bf16 = jax.jit(functools.partial(patch_embed_3d, kernel_size=kernel_size))
    out = jax.block_until_ready(fwd_bf16(x, weight, bias))
    assert out.shape == ref.shape
    assert jnp.allclose(out, ref, atol=3e-2, rtol=3e-2), "bf16 path mismatch"

    # Exact check: f32 operands.
    fwd_f32 = jax.jit(functools.partial(patch_embed_3d, kernel_size=kernel_size,
                                        compute_dtype=jnp.float32))
    out_f32 = jax.block_until_ready(fwd_f32(x, weight, bias))
    assert jnp.allclose(out_f32, ref, atol=1e-4, rtol=1e-4), "f32 path mismatch"

    print("KERNEL_OK")
</pallas_src>

<mosaic_0001>
module attributes {stable_mosaic.version = 11 : i64} {
  func.func @_patch_embed_kernel(%arg0: i32, %arg1: memref<16x128xbf16, #tpu.memory_space<vmem>>, %arg2: memref<128x128xbf16, #tpu.memory_space<vmem>>, %arg3: memref<1x128xf32, #tpu.memory_space<vmem>>, %arg4: memref<16x128xf32, #tpu.memory_space<vmem>>) attributes {dimension_semantics = [#tpu.dimension_semantics<parallel>], iteration_bounds = array<i64: 1>, scalar_prefetch = 0 : i64, scratch_operands = 0 : i64, tpu.core_type = #tpu.core_type<tc>, window_params = [{transform_indices = @transform_0, window_bounds = array<i64: 16, 128>}, {pipeline_mode = #tpu.pipeline_mode<synchronous>, transform_indices = @transform_1, window_bounds = array<i64: 128, 128>}, {pipeline_mode = #tpu.pipeline_mode<synchronous>, transform_indices = @transform_2, window_bounds = array<i64: 1, 128>}, {transform_indices = @transform_3, window_bounds = array<i64: 16, 128>}]} {
    %c0 = arith.constant 0 : index
    %c0_0 = arith.constant 0 : index
    %0 = vector.load %arg1[%c0, %c0_0] : memref<16x128xbf16, #tpu.memory_space<vmem>>, vector<16x128xbf16>
    %c0_1 = arith.constant 0 : index
    %c0_2 = arith.constant 0 : index
    %1 = vector.load %arg2[%c0_1, %c0_2] : memref<128x128xbf16, #tpu.memory_space<vmem>>, vector<128x128xbf16>
    %cst = arith.constant dense<0.000000e+00> : vector<16x128xf32>
    %2 = tpu.matmul %0, %1, %cst {dimension_numbers = #tpu.dot_dimension_numbers<[1], [0], [0], [1], [0, 0, 1, 1], [], []>} : vector<16x128xbf16>, vector<128x128xbf16>, vector<16x128xf32> -> vector<16x128xf32>
    %c0_3 = arith.constant 0 : index
    %c0_4 = arith.constant 0 : index
    %3 = vector.load %arg3[%c0_3, %c0_4] : memref<1x128xf32, #tpu.memory_space<vmem>>, vector<1x128xf32>
    %4 = vector.broadcast %3 : vector<1x128xf32> to vector<16x128xf32>
    %5 = arith.addf %2, %4 : vector<16x128xf32>
    %c0_5 = arith.constant 0 : index
    %c0_6 = arith.constant 0 : index
    %6 = vector.load %arg4[%c0_5, %c0_6] : memref<16x128xf32, #tpu.memory_space<vmem>>, vector<16x128xf32>
    tpu.vector_store %arg4[%c0_5, %c0_6], %5 {strides = array<i32>} : memref<16x128xf32, #tpu.memory_space<vmem>>, vector<16x128xf32>,
    return
  }
  func.func @transform_0(%arg0: i32) -> (i32, i32) {
    %c0_i32 = arith.constant 0 : i32
    %c0_i32_0 = arith.constant 0 : i32
    return %arg0, %c0_i32 : i32, i32
  }
  func.func @transform_1(%arg0: i32) -> (i32, i32) {
    %c0_i32 = arith.constant 0 : i32
    %c0_i32_0 = arith.constant 0 : i32
    %c0_i32_1 = arith.constant 0 : i32
    return %c0_i32, %c0_i32_0 : i32, i32
  }
  func.func @transform_2(%arg0: i32) -> (i32, i32) {
    %c0_i32 = arith.constant 0 : i32
    %c0_i32_0 = arith.constant 0 : i32
    %c0_i32_1 = arith.constant 0 : i32
    return %c0_i32, %c0_i32_0 : i32, i32
  }
  func.func @transform_3(%arg0: i32) -> (i32, i32) {
    %c0_i32 = arith.constant 0 : i32
    %c0_i32_0 = arith.constant 0 : i32
    return %arg0, %c0_i32 : i32, i32
  }
}

</mosaic_0001>

<bundles_post_ra>
// kernel: patch_embed_3d.1
= control target key start
LH: loop header
LB: loop body
LE: loop exit
PB: predicated region body
PF: predicated region fallthrough
CT: control target
= control target key end

     0   :  { %s256_s0 = inlined_call_operand.vmem [shape: bf16[16,128], index: 0, kind: input, shape index: {}]   ;;  %s257_s1 = inlined_call_operand.vmem [shape: bf16[128,128], index: 1, kind: input, shape index: {}]   ;;  %s258_s2 = inlined_call_operand.vmem [shape: f32[1,128], index: 2, kind: input, shape index: {}]   ;;  %s259_s3 = inlined_call_operand.hbm [shape: f32[16,128], index: 3, kind: output, shape index: {}]  }
   0x1   :  { %v169_v0 = vld [vmem:[%s257_s1 + $0x38] sm:$0xff]  ;;  %v168_v1 = vld [vmem:[%s257_s1 + $0x30] sm:$0xff] }
   0x2   :  { %91 = vmatpush.bf16.msra.mxu0 %v169_v0 }
   0x3   :  { %8 = vsyncpa [#allocation3], 0  ;;  %v167_v2 = vld [vmem:[%s257_s1 + $0x28] sm:$0xff]  ;;  %v166_v3 = vld [vmem:[%s257_s1 + $0x20] sm:$0xff]  ;;  %s200_s5 = smov [#allocation2]   ;;  %s113_s9 = sshll.u32 %s259_s3, 4  ;;  %s114_s9 = int_to_ptr.hbm [resolvable:$true] %s113_s9 }
   0x4   :  { %v165_v4 = vld [vmem:[%s257_s1 + $0x18] sm:$0xff]  ;;  %v164_v5 = vld [vmem:[%s257_s1 + $0x10] sm:$0xff]  ;;  %v163_v6 = vld [vmem:[%s257_s1 + $0x8] sm:$0xff]  ;;  %s111_s6 = sshll.u32 %s200_s5, 4  ;;  %s112_s6 = int_to_ptr.vmem [resolvable:$true] %s111_s6 }
   0x5   :  { %v162_v7 = vld [vmem:[%s257_s1] sm:$0xff]  ;;  %s202_s1 = smov 8  }
   0x6   :  { %92 = vmatpush.bf16.msra.mxu0 %v168_v1  ;;  %v161_v8 = vld [vmem:[%s256_s0] sm:$0xff]  ;;  %s201_s0 = smov 128  }
   0x7   :  { %v173_v9 = vld [vmem:[%s258_s2] ss:$0 sm:$0xff] }
   0xa   :  { %93 = vmatpush.bf16.msra.mxu0 %v167_v2 }
   0xe   :  { %94 = vmatpush.bf16.msra.mxu0 %v166_v3 }
  0x12   :  { %95 = vmatpush.bf16.msra.mxu0 %v165_v4 }
  0x16   :  { %96 = vmatpush.bf16.msra.mxu0 %v164_v5 }
  0x1a   :  { %97 = vmatpush.bf16.msra.mxu0 %v163_v6 }
  0x1e   :  { %98 = vmatpush.bf16.msra.mxu0 %v162_v7 }
  0x21   :  { %99 = vmatmul.bf16.vlgmr.msra.gmra.mxu0 %v161_v8 }
  0x9e   :  { %v100_v10 = vpop.f32.mrf.mxu0 }
  0x9f   :  { %v101_v11 = vadd.f32 %v173_v9, %v100_v10 }
  0xa1   :  { %105 = vst [vmem:[#allocation2] sm:$0xff] %v101_v11 }
  0xa6   :  { %v102_v12 = vpop.f32.mrf.mxu0 }
  0xa7   :  { %v103_v13 = vadd.f32 %v173_v9, %v102_v12 }
  0xa9   :  { %106 = vst [vmem:[#allocation2 + $0x8] sm:$0xff] %v103_v13 }
  0xaa   :  { %119 = dma.vmem_to_hbm [thread:$0]  %s112_s6, 256, %s114_s9, [#allocation3], %s201_s0, %s201_s0, %s202_s1  }
  0xab   :  { %198 = dma.done.wait [#allocation3], 256  }
  0xac   :  { %199 = vsyncadd [#allocation3], 4294967040 }
  0xad   :  { %124 = vsyncpa [#allocation3], 1 }

</bundles_post_ra>
